<compile_context>
chip_gen: v7x
topology: tpu7x:2x2x1
jax: 0.10.0
libtpu: 0.0.40
codegen_flags: <defaults>
</compile_context>

<pallas_src>
import functools
import math

import jax
import jax.numpy as jnp
from jax import lax
from jax.experimental import pallas as pl
from jax.experimental.pallas import tpu as pltpu

N_QUBITS = 4
Q_DEPTH = 4
BN_EPS = 1e-5

IN_FEATURES = 16
OUT_FEATURES = 10

TILE_B = 2048   # lanes per grid step (amortizes ~0.35us/step fixed overhead)
SUB_B = 512     # in-kernel strip-mine chunk (bounds vreg pressure)

# Packed constants column: 8-aligned segment offsets into a (120, 1) array.
_B1_OFF, _B2_OFF, _QR_OFF, _QP_OFF = 0, 32, 40, 48
_B3_OFF, _B4_OFF, _B5_OFF = 56, 88, 104
_CONST_ROWS = 120


def _round_up(n, m):
    return ((n + m - 1) // m) * m


# ----------------------------------------------------------------------------
# Pallas kernel: full fused forward for one (16, tile_b) batch tile.
# ----------------------------------------------------------------------------
def qnn_kernel(x_ref,                                   # (16, tile_b)
               w1_ref, w2_ref, w3_ref, w4_ref, w5_ref,  # (32,16)(4,32)(32,4)(16,32)(10,16)
               c_ref,                                    # (120, 1) packed biases/coeffs
               out_ref,                                  # (10, tile_b)
               *, sub_b, n_chunks):

    def chunk(ci, carry):
        off = pl.multiple_of(ci * sub_b, sub_b)
        cols = pl.ds(off, sub_b)

        # pre_net: Linear(16,32) -> ReLU -> [BN folded into W2] -> Linear(32,4) -> Tanh
        x = x_ref[:, cols]                                              # (16, sub_b)
        h = jnp.dot(w1_ref[...], x, preferred_element_type=jnp.float32)
        h = jnp.maximum(h + c_ref[_B1_OFF:_B1_OFF + 32, :], 0.0)
        h = jnp.dot(w2_ref[...], h, preferred_element_type=jnp.float32)
        h = jnp.tanh(h + c_ref[_B2_OFF:_B2_OFF + N_QUBITS, :])          # (4, sub_b)

        # quantum circuits: exact <PauliZ> after RY(pi*h) followed by the fixed
        # per-qubit rotation chain, collapsed to R*sin(pi*h + phi).
        theta = h * jnp.float32(math.pi)
        q = (c_ref[_QR_OFF:_QR_OFF + N_QUBITS, :]
             * jnp.sin(theta + c_ref[_QP_OFF:_QP_OFF + N_QUBITS, :]))

        # post_net: Linear(4,32) -> ReLU -> [BN folded] -> Linear(32,16) -> ReLU
        #           -> [BN folded] -> Linear(16,10)
        h = jnp.dot(w3_ref[...], q, preferred_element_type=jnp.float32)
        h = jnp.maximum(h + c_ref[_B3_OFF:_B3_OFF + 32, :], 0.0)
        h = jnp.dot(w4_ref[...], h, preferred_element_type=jnp.float32)
        h = jnp.maximum(h + c_ref[_B4_OFF:_B4_OFF + 16, :], 0.0)
        h = jnp.dot(w5_ref[...], h, preferred_element_type=jnp.float32)
        h = h + c_ref[_B5_OFF:_B5_OFF + OUT_FEATURES, :]

        out_ref[:, cols] = h.astype(out_ref.dtype)
        return carry

    lax.fori_loop(0, n_chunks, chunk, 0, unroll=True)


# ----------------------------------------------------------------------------
# Parameter construction (PyTorch-native (out, in) layout) + wrapper-side folds
# ----------------------------------------------------------------------------
def _linear(key, fan_in, fan_out):
    kw, kb = jax.random.split(key)
    bound = 1.0 / math.sqrt(fan_in)
    w = jax.random.uniform(kw, (fan_out, fan_in), jnp.float32, -bound, bound)
    b = jax.random.uniform(kb, (fan_out,), jnp.float32, -bound, bound)
    return w, b


def _bn_init(num_features):
    # gamma=1, beta=0, running_mean=0, running_var=1 (fresh BatchNorm1d)
    return (jnp.ones((num_features,), jnp.float32),
            jnp.zeros((num_features,), jnp.float32),
            jnp.zeros((num_features,), jnp.float32),
            jnp.ones((num_features,), jnp.float32))


def _bn_fold(bn):
    gamma, beta, mean, var = bn
    scale = gamma / jnp.sqrt(var + BN_EPS)
    shift = beta - mean * scale
    return scale, shift


def _fold_bn_into_next(w_next, b_next, scale, shift):
    # next layer computes  W @ (h*scale + shift) + b  ==  (W*scale) @ h + (W@shift + b)
    return w_next * scale[None, :], b_next + w_next @ shift


def _quantum_coeffs(qw):
    """Collapse the fixed per-qubit rotation chain into (a, c) with
       <Z> = a*sin(pi*x) + c*cos(pi*x).  qw has shape (N_QUBITS, Q_DEPTH)."""
    def evolve(bx, by, bz):
        for i in range(Q_DEPTH):
            w = qw[:, i]
            c, s = jnp.cos(w), jnp.sin(w)
            bx, bz = bx * c + bz * s, -bx * s + bz * c      # RY(w)
            bx, by = bx * c - by * s, bx * s + by * c       # RZ(w)
            if i < Q_DEPTH - 1:                             # RX(pi/2)
                by, bz = -bz, by
        return bz
    ones = jnp.ones((N_QUBITS,), jnp.float32)
    zeros = jnp.zeros((N_QUBITS,), jnp.float32)
    a = evolve(ones, zeros, zeros)
    c = evolve(zeros, zeros, ones)
    return a, c


def init_params(key):
    k1, k2, k3, k4, k5, kq = jax.random.split(key, 6)
    w1, b1 = _linear(k1, 16, 32)
    w2, b2 = _linear(k2, 32, N_QUBITS)
    qw = 0.1 * jax.random.normal(kq, (N_QUBITS, Q_DEPTH), jnp.float32)
    w3, b3 = _linear(k3, N_QUBITS, 32)
    w4, b4 = _linear(k4, 32, 16)
    w5, b5 = _linear(k5, 16, 10)
    return dict(w1=w1, b1=b1, bn1=_bn_init(32),
                w2=w2, b2=b2, qw=qw,
                w3=w3, b3=b3, bn3=_bn_init(32),
                w4=w4, b4=b4, bn4=_bn_init(16),
                w5=w5, b5=b5)


def prepare_kernel_params(p):
    s1, t1 = _bn_fold(p["bn1"])
    s3, t3 = _bn_fold(p["bn3"])
    s4, t4 = _bn_fold(p["bn4"])
    w2f, b2f = _fold_bn_into_next(p["w2"], p["b2"], s1, t1)
    w4f, b4f = _fold_bn_into_next(p["w4"], p["b4"], s3, t3)
    w5f, b5f = _fold_bn_into_next(p["w5"], p["b5"], s4, t4)

    a, c = _quantum_coeffs(p["qw"])
    qr = jnp.sqrt(a * a + c * c)                   # a*sin(t)+c*cos(t) == R*sin(t+phi)
    qphi = jnp.arctan2(c, a)

    consts = jnp.zeros((_CONST_ROWS, 1), jnp.float32)
    for off, v in ((_B1_OFF, p["b1"]), (_B2_OFF, b2f), (_QR_OFF, qr),
                   (_QP_OFF, qphi), (_B3_OFF, p["b3"]), (_B4_OFF, b4f),
                   (_B5_OFF, b5f)):
        consts = consts.at[off:off + v.shape[0], 0].set(v.astype(jnp.float32))

    weights = tuple(w.astype(jnp.float32)
                    for w in (p["w1"], w2f, p["w3"], w4f, w5f))
    return weights + (consts,)


# ----------------------------------------------------------------------------
# Wrapper
# ----------------------------------------------------------------------------
def _choose_tiles(batch, tile_b=TILE_B, sub_b=SUB_B, min_grid_steps=2):
    """Lane-aligned (tile_b, sub_b); aims for >= min_grid_steps grid steps so
    both v7x TensorCores get work."""
    lanes = _round_up(batch, 128)
    tile_b = min(tile_b, lanes)
    if lanes // tile_b < min_grid_steps and tile_b > 128:
        tile_b = max(128, _round_up(-(-lanes // min_grid_steps), 128))
    sub_b = min(sub_b, tile_b)
    tile_b = _round_up(tile_b, sub_b)          # inner strip-mine must divide the tile
    return tile_b, sub_b


def qnn_forward(x, kernel_params, tile_b=TILE_B, sub_b=SUB_B):
    B = x.shape[0]
    # Batch-on-lanes layout.  A producer that already emits (16, B) -- and a
    # consumer that accepts the kernel-native (10, B) -- would remove the two
    # remaining wrapper-side transpose passes entirely.
    xt = x.reshape(B, -1).astype(jnp.float32).T                 # (16, B)
    assert xt.shape[0] == IN_FEATURES, "pre_net expects 16 input features"

    tile_b, sub_b = _choose_tiles(B, tile_b, sub_b)
    n_steps = pl.cdiv(B, tile_b)          # ragged last tile handled by Pallas clamping
    n_chunks = tile_b // sub_b

    x_spec = pl.BlockSpec((IN_FEATURES, tile_b), lambda i: (0, i))
    out_spec = pl.BlockSpec((OUT_FEATURES, tile_b), lambda i: (0, i))
    # Full-shape blocks with constant block index: stay VMEM-resident, no re-DMA.
    const_specs = [pl.BlockSpec(p.shape, lambda i: (0, 0)) for p in kernel_params]

    cols = n_steps * tile_b
    flops = 2 * cols * (16 * 32 + 32 * N_QUBITS + N_QUBITS * 32 + 32 * 16 + 16 * 10)
    transcendentals = 2 * N_QUBITS * cols                        # tanh + sin
    bytes_accessed = (4 * B * (IN_FEATURES + OUT_FEATURES)
                      + sum(4 * int(p.size) for p in kernel_params))

    out_t = pl.pallas_call(
        functools.partial(qnn_kernel, sub_b=sub_b, n_chunks=n_chunks),
        grid=(n_steps,),
        out_shape=jax.ShapeDtypeStruct((OUT_FEATURES, B), jnp.float32),
        in_specs=[x_spec] + const_specs,
        out_specs=out_spec,
        compiler_params=pltpu.CompilerParams(
            dimension_semantics=("parallel",),
            vmem_limit_bytes=32 * 1024 * 1024),
        cost_estimate=pl.CostEstimate(
            flops=flops,
            transcendentals=transcendentals,
            bytes_accessed=bytes_accessed),
    )(xt, *kernel_params)

    return out_t.T                                               # (B, 10)


# ----------------------------------------------------------------------------
# Pure-JAX reference (unfolded: explicit BN + full per-depth rotation loop)
# ----------------------------------------------------------------------------
def qnn_reference(x, p):
    B = x.shape[0]
    h = x.reshape(B, -1).astype(jnp.float32)

    def bn(h, stats):
        gamma, beta, mean, var = stats
        return (h - mean) / jnp.sqrt(var + BN_EPS) * gamma + beta

    h = jnp.maximum(h @ p["w1"].T + p["b1"], 0.0)
    h = bn(h, p["bn1"])                                    # Dropout = identity (eval)
    h = jnp.tanh(h @ p["w2"].T + p["b2"])                  # (B, N_QUBITS)

    theta = h * math.pi
    bx, by, bz = jnp.sin(theta), jnp.zeros_like(theta), jnp.cos(theta)  # after RY(x*pi)
    for i in range(Q_DEPTH):
        w = p["qw"][:, i][None, :]
        c, s = jnp.cos(w), jnp.sin(w)
        bx, bz = bx * c + bz * s, -bx * s + bz * c         # RY(w_i)
        bx, by = bx * c - by * s, bx * s + by * c          # RZ(w_i)
        if i < Q_DEPTH - 1:                                # RX(pi/2)
            by, bz = -bz, by
    q = bz                                                 # expval(PauliZ)

    h = jnp.maximum(q @ p["w3"].T + p["b3"], 0.0)
    h = bn(h, p["bn3"])
    h = jnp.maximum(h @ p["w4"].T + p["b4"], 0.0)
    h = bn(h, p["bn4"])
    return h @ p["w5"].T + p["b5"]


if __name__ == "__main__":
    key = jax.random.PRNGKey(0)
    k_x, k_p = jax.random.split(key)

    # Small deterministic input: (batch=16, 1, 4, 4) -> flattens to (16, 16)
    x = jax.random.normal(k_x, (16, 1, 4, 4), jnp.float32)
    raw_params = init_params(k_p)
    kernel_params = prepare_kernel_params(raw_params)

    out = qnn_forward(x, kernel_params)
    out = jax.block_until_ready(out)

    ref = qnn_reference(x, raw_params)
    assert out.shape == (16, 10)
    err = float(jnp.max(jnp.abs(out - ref)))
    assert err < 1e-4, f"mismatch vs reference, max abs err = {err}"

    print("KERNEL_OK")
</pallas_src>

<mosaic_0001>
module attributes {stable_mosaic.version = 11 : i64} {
  func.func @qnn_kernel(%arg0: i32, %arg1: memref<16x128xf32, #tpu.memory_space<vmem>>, %arg2: memref<32x16xf32, #tpu.memory_space<vmem>>, %arg3: memref<4x32xf32, #tpu.memory_space<vmem>>, %arg4: memref<32x4xf32, #tpu.memory_space<vmem>>, %arg5: memref<16x32xf32, #tpu.memory_space<vmem>>, %arg6: memref<10x16xf32, #tpu.memory_space<vmem>>, %arg7: memref<120x1xf32, #tpu.memory_space<vmem>>, %arg8: memref<10x128xf32, #tpu.memory_space<vmem>>) attributes {dimension_semantics = [#tpu.dimension_semantics<parallel>], iteration_bounds = array<i64: 1>, scalar_prefetch = 0 : i64, scratch_operands = 0 : i64, tpu.core_type = #tpu.core_type<tc>, window_params = [{transform_indices = @transform_0, window_bounds = array<i64: 16, 128>}, {pipeline_mode = #tpu.pipeline_mode<synchronous>, transform_indices = @transform_1, window_bounds = array<i64: 32, 16>}, {pipeline_mode = #tpu.pipeline_mode<synchronous>, transform_indices = @transform_2, window_bounds = array<i64: 4, 32>}, {pipeline_mode = #tpu.pipeline_mode<synchronous>, transform_indices = @transform_3, window_bounds = array<i64: 32, 4>}, {pipeline_mode = #tpu.pipeline_mode<synchronous>, transform_indices = @transform_4, window_bounds = array<i64: 16, 32>}, {pipeline_mode = #tpu.pipeline_mode<synchronous>, transform_indices = @transform_5, window_bounds = array<i64: 10, 16>}, {pipeline_mode = #tpu.pipeline_mode<synchronous>, transform_indices = @transform_6, window_bounds = array<i64: 120, 1>}, {transform_indices = @transform_7, window_bounds = array<i64: 10, 128>}]} {
    %c0_i32 = arith.constant 0 : i32
    %c128_i32 = arith.constant 128 : i32
    %0 = arith.muli %c0_i32, %c128_i32 : i32
    %1 = tpu.assume_multiple %0, 128 : i32
    %c0 = arith.constant 0 : index
    %2 = arith.index_cast %1 : i32 to index
    %3 = vector.load %arg1[%c0, %2] : memref<16x128xf32, #tpu.memory_space<vmem>>, vector<16x128xf32>
    %c0_0 = arith.constant 0 : index
    %c0_1 = arith.constant 0 : index
    %4 = vector.load %arg2[%c0_0, %c0_1] : memref<32x16xf32, #tpu.memory_space<vmem>>, vector<32x16xf32>
    %cst = arith.constant dense<0.000000e+00> : vector<32x128xf32>
    %5 = tpu.matmul %4, %3, %cst {dimension_numbers = #tpu.dot_dimension_numbers<[1], [0], [0], [1], [0, 0, 1, 1], [], []>} : vector<32x16xf32>, vector<16x128xf32>, vector<32x128xf32> -> vector<32x128xf32>
    %c0_2 = arith.constant 0 : index
    %c0_3 = arith.constant 0 : index
    %6 = vector.load %arg7[%c0_2, %c0_3] : memref<120x1xf32, #tpu.memory_space<vmem>>, vector<32x1xf32>
    %7 = vector.broadcast %6 : vector<32x1xf32> to vector<32x128xf32>
    %8 = arith.addf %5, %7 : vector<32x128xf32>
    %cst_4 = arith.constant 0.000000e+00 : f32
    %9 = vector.broadcast %cst_4 : f32 to vector<32x128xf32>
    %10 = arith.maximumf %8, %9 : vector<32x128xf32>
    %c0_5 = arith.constant 0 : index
    %c0_6 = arith.constant 0 : index
    %11 = vector.load %arg3[%c0_5, %c0_6] : memref<4x32xf32, #tpu.memory_space<vmem>>, vector<4x32xf32>
    %cst_7 = arith.constant dense<0.000000e+00> : vector<4x128xf32>
    %12 = tpu.matmul %11, %10, %cst_7 {dimension_numbers = #tpu.dot_dimension_numbers<[1], [0], [0], [1], [0, 0, 1, 1], [], []>} : vector<4x32xf32>, vector<32x128xf32>, vector<4x128xf32> -> vector<4x128xf32>
    %c32 = arith.constant 32 : index
    %c0_8 = arith.constant 0 : index
    %13 = vector.load %arg7[%c32, %c0_8] : memref<120x1xf32, #tpu.memory_space<vmem>>, vector<4x1xf32>
    %14 = vector.broadcast %13 : vector<4x1xf32> to vector<4x128xf32>
    %15 = arith.addf %12, %14 : vector<4x128xf32>
    %16 = math.tanh %15 : vector<4x128xf32>
    %cst_9 = arith.constant 3.14159274 : f32
    %17 = vector.broadcast %cst_9 : f32 to vector<4x128xf32>
    %18 = arith.mulf %16, %17 : vector<4x128xf32>
    %c40 = arith.constant 40 : index
    %c0_10 = arith.constant 0 : index
    %19 = vector.load %arg7[%c40, %c0_10] : memref<120x1xf32, #tpu.memory_space<vmem>>, vector<4x1xf32>
    %c48 = arith.constant 48 : index
    %c0_11 = arith.constant 0 : index
    %20 = vector.load %arg7[%c48, %c0_11] : memref<120x1xf32, #tpu.memory_space<vmem>>, vector<4x1xf32>
    %21 = vector.broadcast %20 : vector<4x1xf32> to vector<4x128xf32>
    %22 = arith.addf %18, %21 : vector<4x128xf32>
    %23 = math.sin %22 : vector<4x128xf32>
    %24 = vector.broadcast %19 : vector<4x1xf32> to vector<4x128xf32>
    %25 = arith.mulf %24, %23 : vector<4x128xf32>
    %c0_12 = arith.constant 0 : index
    %c0_13 = arith.constant 0 : index
    %26 = vector.load %arg4[%c0_12, %c0_13] : memref<32x4xf32, #tpu.memory_space<vmem>>, vector<32x4xf32>
    %cst_14 = arith.constant dense<0.000000e+00> : vector<32x128xf32>
    %27 = tpu.matmul %26, %25, %cst_14 {dimension_numbers = #tpu.dot_dimension_numbers<[1], [0], [0], [1], [0, 0, 1, 1], [], []>} : vector<32x4xf32>, vector<4x128xf32>, vector<32x128xf32> -> vector<32x128xf32>
    %c56 = arith.constant 56 : index
    %c0_15 = arith.constant 0 : index
    %28 = vector.load %arg7[%c56, %c0_15] : memref<120x1xf32, #tpu.memory_space<vmem>>, vector<32x1xf32>
    %29 = vector.broadcast %28 : vector<32x1xf32> to vector<32x128xf32>
    %30 = arith.addf %27, %29 : vector<32x128xf32>
    %cst_16 = arith.constant 0.000000e+00 : f32
    %31 = vector.broadcast %cst_16 : f32 to vector<32x128xf32>
    %32 = arith.maximumf %30, %31 : vector<32x128xf32>
    %c0_17 = arith.constant 0 : index
    %c0_18 = arith.constant 0 : index
    %33 = vector.load %arg5[%c0_17, %c0_18] : memref<16x32xf32, #tpu.memory_space<vmem>>, vector<16x32xf32>
    %cst_19 = arith.constant dense<0.000000e+00> : vector<16x128xf32>
    %34 = tpu.matmul %33, %32, %cst_19 {dimension_numbers = #tpu.dot_dimension_numbers<[1], [0], [0], [1], [0, 0, 1, 1], [], []>} : vector<16x32xf32>, vector<32x128xf32>, vector<16x128xf32> -> vector<16x128xf32>
    %c88 = arith.constant 88 : index
    %c0_20 = arith.constant 0 : index
    %35 = vector.load %arg7[%c88, %c0_20] : memref<120x1xf32, #tpu.memory_space<vmem>>, vector<16x1xf32>
    %36 = vector.broadcast %35 : vector<16x1xf32> to vector<16x128xf32>
    %37 = arith.addf %34, %36 : vector<16x128xf32>
    %cst_21 = arith.constant 0.000000e+00 : f32
    %38 = vector.broadcast %cst_21 : f32 to vector<16x128xf32>
    %39 = arith.maximumf %37, %38 : vector<16x128xf32>
    %c0_22 = arith.constant 0 : index
    %c0_23 = arith.constant 0 : index
    %40 = vector.load %arg6[%c0_22, %c0_23] : memref<10x16xf32, #tpu.memory_space<vmem>>, vector<10x16xf32>
    %cst_24 = arith.constant dense<0.000000e+00> : vector<10x128xf32>
    %41 = tpu.matmul %40, %39, %cst_24 {dimension_numbers = #tpu.dot_dimension_numbers<[1], [0], [0], [1], [0, 0, 1, 1], [], []>} : vector<10x16xf32>, vector<16x128xf32>, vector<10x128xf32> -> vector<10x128xf32>
    %c104 = arith.constant 104 : index
    %c0_25 = arith.constant 0 : index
    %42 = vector.load %arg7[%c104, %c0_25] : memref<120x1xf32, #tpu.memory_space<vmem>>, vector<10x1xf32>
    %43 = vector.broadcast %42 : vector<10x1xf32> to vector<10x128xf32>
    %44 = arith.addf %41, %43 : vector<10x128xf32>
    %c0_26 = arith.constant 0 : index
    %45 = arith.index_cast %1 : i32 to index
    %46 = vector.load %arg8[%c0_26, %45] : memref<10x128xf32, #tpu.memory_space<vmem>>, vector<10x128xf32>
    tpu.vector_store %arg8[%c0_26, %45], %44 {strides = array<i32>} : memref<10x128xf32, #tpu.memory_space<vmem>>, vector<10x128xf32>,
    %c1_i32 = arith.constant 1 : i32
    return
  }
  func.func @transform_0(%arg0: i32) -> (i32, i32) {
    %c0_i32 = arith.constant 0 : i32
    %c0_i32_0 = arith.constant 0 : i32
    return %c0_i32, %arg0 : i32, i32
  }
  func.func @transform_1(%arg0: i32) -> (i32, i32) {
    %c0_i32 = arith.constant 0 : i32
    %c0_i32_0 = arith.constant 0 : i32
    %c0_i32_1 = arith.constant 0 : i32
    return %c0_i32, %c0_i32_0 : i32, i32
  }
  func.func @transform_2(%arg0: i32) -> (i32, i32) {
    %c0_i32 = arith.constant 0 : i32
    %c0_i32_0 = arith.constant 0 : i32
    %c0_i32_1 = arith.constant 0 : i32
    return %c0_i32, %c0_i32_0 : i32, i32
  }
  func.func @transform_3(%arg0: i32) -> (i32, i32) {
    %c0_i32 = arith.constant 0 : i32
    %c0_i32_0 = arith.constant 0 : i32
    %c0_i32_1 = arith.constant 0 : i32
    return %c0_i32, %c0_i32_0 : i32, i32
  }
  func.func @transform_4(%arg0: i32) -> (i32, i32) {
    %c0_i32 = arith.constant 0 : i32
    %c0_i32_0 = arith.constant 0 : i32
    %c0_i32_1 = arith.constant 0 : i32
    return %c0_i32, %c0_i32_0 : i32, i32
  }
  func.func @transform_5(%arg0: i32) -> (i32, i32) {
    %c0_i32 = arith.constant 0 : i32
    %c0_i32_0 = arith.constant 0 : i32
    %c0_i32_1 = arith.constant 0 : i32
    return %c0_i32, %c0_i32_0 : i32, i32
  }
  func.func @transform_6(%arg0: i32) -> (i32, i32) {
    %c0_i32 = arith.constant 0 : i32
    %c0_i32_0 = arith.constant 0 : i32
    %c0_i32_1 = arith.constant 0 : i32
    return %c0_i32, %c0_i32_0 : i32, i32
  }
  func.func @transform_7(%arg0: i32) -> (i32, i32) {
    %c0_i32 = arith.constant 0 : i32
    %c0_i32_0 = arith.constant 0 : i32
    return %c0_i32, %arg0 : i32, i32
  }
}

</mosaic_0001>

<bundles_post_ra>
// kernel: tpu_custom_call.1
= control target key start
LH: loop header
LB: loop body
LE: loop exit
PB: predicated region body
PF: predicated region fallthrough
CT: control target
= control target key end

     0   :  { %vm57_vm0 = vcmask 130048   ;;  %v866_v4 = vmov 0   ;;  %s1055_s0 = inlined_call_operand.vmem [shape: f32[16,16], index: 0, kind: input, shape index: {}]   ;;  %s1056_s1 = inlined_call_operand.vmem [shape: f32[32,16], index: 1, kind: input, shape index: {}]   ;;  %s1057_s2 = inlined_call_operand.vmem [shape: f32[4,32], index: 2, kind: input, shape index: {}]   ;;  %s1058_s3 = inlined_call_operand.vmem [shape: f32[32,4], index: 3, kind: input, shape index: {}]   ;;  %s1059_s4 = inlined_call_operand.vmem [shape: f32[16,32], index: 4, kind: input, shape index: {}]   ;;  %s1060_s5 = inlined_call_operand.vmem [shape: f32[10,16], index: 5, kind: input, shape index: {}]   ;;  %s1061_s6 = inlined_call_operand.vmem [shape: f32[120,1], index: 6, kind: input, shape index: {}]   ;;  %s1062_s7 = inlined_call_operand.hbm [shape: f32[10,16], index: 7, kind: output, shape index: {}]  }
   0x1   :  { %v27_v0 = vld [vmem:[%s1055_s0] sm:$0xff]  ;;  %v28_v1 = vld [vmem:[%s1055_s0 + $0x8] sm:$0xff]  ;;  %834 = vset.pattern.permute.xlu0 %v866_v4  ;;  %835 = vset.pattern.permute.xlu1 %v866_v4  ;;  %v35_v6 = vld [vmem:[%s1061_s6 + $0x10] sm:$0xff] }
   0x2   :  { %v29_v2 = vld [vmem:[%s1056_s1] sm:$0xff]  ;;  %v795_v3 = vpack.c.bf16 %v28_v1, %v27_v0  ;;  %v30_v7 = vld [vmem:[%s1056_s1 + $0x8] sm:$0xff]  ;;  %49 = vperm.xlu1 %835, %v35_v6   ;;  %v31_v9 = vld [vmem:[%s1056_s1 + $0x10] sm:$0xff] }
   0x3   :  { %752 = vmatprep.mubr.msk.f32.mxu0 %vm57_vm0, %v29_v2  ;;  %v33_v5 = vld [vmem:[%s1061_s6] sm:$0xff]  ;;  %v34_v8 = vld [vmem:[%s1061_s6 + $0x8] sm:$0xff]  ;;  %v36_v10 = vld [vmem:[%s1061_s6 + $0x18] sm:$0xff] }
   0x4   :  { %796 = vmatprep.subr.bf16.mxu0 %v795_v3  ;;  %39 = vperm.xlu0 %834, %v33_v5  }
   0x5   :  { %798 = vmatpush3.bf16.msra.mxu0 %v795_v3 }
   0x8   :  { %753 = vmatmul.mubr.msk.f32.vlgmr.msra.gmra.mrb[0].mxu0 %vm57_vm0, %v30_v7  ;;  %44 = vperm.xlu0 %834, %v34_v8  }
   0x9   :  { %12 = vsyncpa [#allocation3], 0  ;;  %755 = vmatprep.mubr.msk.f32.mxu0 %vm57_vm0, %v31_v9  ;;  %v32_v11 = vld [vmem:[%s1056_s1 + $0x18] sm:$0xff]  ;;  %v160_v12 = vld [vmem:[%s1061_s6 + $0x20] sm:$0xf]  ;;  %54 = vperm.xlu1 %835, %v36_v10   ;;  %v867_v23 = vmov 0.0|0.0  }
   0xa   :  { %v243_v13 = vld [vmem:[%s1061_s6 + $0x30] sm:$0xf]  ;;  %v242_v14 = vld [vmem:[%s1061_s6 + $0x28] sm:$0xf]  ;;  %v364_v15 = vld [vmem:[%s1061_s6 + $0x38] sm:$0xff]  ;;  %799 = vmatprep.subr.bf16.mxu1 %v867_v23  ;;  %vm868_vm1 = vmmov 0  }
   0xb   :  { %v365_v16 = vld [vmem:[%s1061_s6 + $0x40] sm:$0xff]  ;;  %v366_v17 = vld [vmem:[%s1061_s6 + $0x48] sm:$0xff]  ;;  %v367_v18 = vld [vmem:[%s1061_s6 + $0x50] sm:$0xff]  ;;  %v869_v24 = vmov 0.0   ;;  %vm166_vm2 = vcmask 261120   ;;  %vm388_vm3 = vcmask 31744  }
   0xc   :  { %756 = vmatmul.mubr.msk.f32.gmra.mrb[2].mxu0 %vm57_vm0, %v32_v11  ;;  %163 = vperm.xlu0 %834, %v160_v12   ;;  %v496_v19 = vld [vmem:[%s1061_s6 + $0x58] sm:$0xff]  ;;  %v497_v20 = vld [vmem:[%s1061_s6 + $0x60] sm:$0xff]  ;;  %v593_v21 = vld [vmem:[%s1061_s6 + $0x68] sm:$0xff]  ;;  %v870_v63 = vmov 683565275   ;;  %s876_s30 = smov [#allocation2]  }
   0xd   :  { %246 = vperm.xlu1 %835, %v243_v13   ;;  %v594_v22 = vld [vmem:[%s1061_s6 + $0x70] sm:$0x3]  ;;  %766 = vmatprep.mubr.msk.f32.mxu1 %vm868_vm1, %v869_v24  ;;  %v159_v43 = vld [vmem:[%s1057_s2] sm:$0xf]  ;;  %v871_v1 = vmov 2475754826  }
   0xe   :  { %v360_v44 = vld [vmem:[%s1058_s3] sm:$0xff]  ;;  %v872_v4 = vmov 2131351028   ;;  %v873_v7 = vmov 2102212464   ;;  %s693_s8 = sshll.u32 %s876_s30, 4  ;;  %s694_s8 = int_to_ptr.vmem [resolvable:$true] %s693_s8 }
   0xf   :  { %771 = vmatprep.mubr.msk.f32.mxu0 %vm388_vm3, %v360_v44  ;;  %v874_v10 = vmov 920167782   ;;  %v875_v13 = vmov 1326507024   ;;  %s842_s9 = scalar_lea.vmem %s694_s8, 256  ;;  %p847_p1 = scmp.lt.s32.totalorder %s694_s8, %s694_s8 }
  0x10   :  { %356 = vperm.xlu0 %834, %v242_v14   ;;  %p843_p0 = scmp.ne.s32.totalorder %s694_s8, %s842_s9  ;;  %p848_p2 = scmp.lt.s32.totalorder %s842_s9, %s842_s9 }
  0x11   :  { %370 = vperm.xlu1 %835, %v364_v15  }
  0x12   :  { %p849_p3 = por %p848_p2, %p847_p1 }
  0x14   :  { %375 = vperm.xlu0 %834, %v365_v16   ;;  %p850_p4 = pnand %p849_p3, %p843_p0 }
  0x15   :  { %380 = vperm.xlu1 %835, %v366_v17  }
  0x18   :  { %385 = vperm.xlu0 %834, %v367_v18  }
  0x19   :  { %500 = vperm.xlu1 %835, %v496_v19  }
  0x1c   :  { %505 = vperm.xlu0 %834, %v497_v20  }
  0x1d   :  { %597 = vperm.xlu1 %835, %v593_v21  }
  0x20   :  { %602 = vperm.xlu0 %834, %v594_v22  }
  0x81   :  { %v50_v26 = vpop.permute.xlu1 %49 }
  0x83   :  { %v40_v25 = vpop.permute.xlu0 %39 }
  0x87   :  { %v45_v27 = vpop.permute.xlu0 %44 }
  0x88   :  { %v55_v33 = vpop.permute.xlu1 %54 }
  0x8b   :  { %v164_v45 = vpop.permute.xlu0 %163 }
  0x8c   :  { %v247_v51 = vpop.permute.xlu1 %246 }
  0xdb   :  { %v754_v28 = vpop.f32.mrb[0].mxu0 }
  0xdc   :  { %v142_v29 = vadd.f32 %v754_v28, %v45_v27  ;;  %v136_v30 = vpop.f32.mrb[1].mxu0 }
  0xdd   :  { %v137_v31 = vadd.f32 %v136_v30, %v40_v25 }
  0xde   :  { %v156_v32 = vmax.f32 %v142_v29, 0.0 }
  0xdf   :  { %v155_v34 = vmax.f32 %v137_v31, 0.0  ;;  %v757_v35 = vpop.f32.mrb[2].mxu0 }
  0xe0   :  { %v152_v36 = vadd.f32 %v757_v35, %v55_v33  ;;  %v146_v37 = vpop.f32.mrb[3].mxu0 }
  0xe1   :  { %v147_v38 = vadd.f32 %v146_v37, %v50_v26  ;;  %v800_v39 = vpack.c.bf16 %v156_v32, %v155_v34 }
  0xe2   :  { %v158_v40 = vmax.f32 %v152_v36, 0.0 }
  0xe3   :  { %v157_v41 = vmax.f32 %v147_v38, 0.0  ;;  %801 = vmatpush3.bf16.msra.mxu1 %v800_v39 }
  0xe4   :  { %802 = vmatprep.subr.bf16.mxu1 %v867_v23 }
  0xe5   :  { %v803_v42 = vpack.c.bf16 %v158_v40, %v157_v41 }
  0xe7   :  { %804 = vmatpush3.bf16.msra.mxu1 %v803_v42 }
  0xea   :  { %767 = vmatmul.mubr.msk.f32.vlgmr.msra.gmra.mrb[0].mxu1 %vm166_vm2, %v159_v43 }
 0x1bd   :  { %v236_v46 = vpop.f32.mrb[0].mxu1 }
 0x1be   :  { %v237_v47 = vadd.f32 %v236_v46, %v164_v45  ;;  %v768_v48 = vpop.f32.mrb[1].mxu1 }
 0x1c0   :  { %836 = vtanh.f32 %v237_v47 }
 0x1ca   :  { %v837_v49 = vpop.eup %836 }
 0x1cb   :  { %v241_v50 = vmul.f32 3.1415927, %v837_v49 }
 0x1cd   :  { %v994_v52 = vadd.f32 %v247_v51, %v241_v50 }
 0x1cf   :  { %v253_v53 = vand.u32 2139095040, %v994_v52  ;;  %v250_v57 = vand.u32 2147483647, %v994_v52  ;;  %vm252_vm11 = vcmp.lt.s32.totalorder %v994_v52, 0  ;;  %vm342_vm1 = vweird.f32 %v994_v52 }
 0x1d1   :  { %v254_v54 = vshrl.u32 %v253_v53, 23  ;;  %v257_v60 = vand.u32 8388607, %v250_v57  ;;  %vm251_vm12 = vcmp.le.f32.partialorder %v250_v57, 0.7853982 }
 0x1d3   :  { %v709_v55 = vadd.s32 4294967169, %v254_v54  ;;  %v258_v15 = vor.u32 8388608, %v257_v60 }
 0x1d5   :  { %v260_v56 = vadd.s32 1, %v709_v55  ;;  %v298_v29 = vshll.u32 %v258_v15, 8 }
 0x1d7   :  { %vm261_vm4 = vcmp.gt.s32.totalorder %v260_v56, 0 }
 0x1d8   :  { %v262_v58 = vsel %vm261_vm4, %v260_v56, 0  ;;  %vm401_vm4 = vcmask 1043456  }
 0x1d9   :  { %v264_v59 = vand.u32 31, %v262_v58  ;;  %v263_v62 = vshrl.u32 %v262_v58, 5 }
 0x1db   :  { %v265_v61 = vsub.s32 32, %v264_v59  ;;  %v267_v0 = vshll.u32 %v870_v63, %v264_v59  ;;  %v270_v2 = vshll.u32 %v871_v1, %v264_v59  ;;  %v273_v6 = vshll.u32 %v872_v4, %v264_v59 }
 0x1dc   :  { %v276_v9 = vshll.u32 %v873_v7, %v264_v59  ;;  %v279_v12 = vshll.u32 %v874_v10, %v264_v59  ;;  %vm282_vm5 = vcmp.lt.s32.totalorder %v263_v62, 1  ;;  %vm285_vm6 = vcmp.lt.s32.totalorder %v263_v62, 4 }
 0x1dd   :  { %v268_v3 = vshrl.u32 %v871_v1, %v265_v61  ;;  %v271_v5 = vshrl.u32 %v872_v4, %v265_v61  ;;  %v274_v8 = vshrl.u32 %v873_v7, %v265_v61  ;;  %v277_v11 = vshrl.u32 %v874_v10, %v265_v61 }
 0x1de   :  { %v280_v14 = vshrl.u32 %v875_v13, %v265_v61  ;;  %v266_v24 = vshrl.u32 %v870_v63, %v265_v61  ;;  %vm284_vm7 = vcmp.lt.s32.totalorder %v263_v62, 3  ;;  %vm283_vm8 = vcmp.lt.s32.totalorder %v263_v62, 2 }
 0x1df   :  { %v269_v16 = vor.u32 %v268_v3, %v267_v0  ;;  %v272_v17 = vor.u32 %v271_v5, %v270_v2  ;;  %v275_v18 = vor.u32 %v274_v8, %v273_v6  ;;  %v278_v19 = vor.u32 %v277_v11, %v276_v9 }
 0x1e0   :  { %v281_v20 = vor.u32 %v280_v14, %v279_v12 }
 0x1e1   :  { %v287_v21 = vsel %vm285_vm6, %v275_v18, 2102212464  ;;  %v290_v22 = vsel %vm282_vm5, %v269_v16, %v272_v17  ;;  %v294_v23 = vsel %vm282_vm5, %v272_v17, %v275_v18  ;;  %v291_v25 = vsel %vm285_vm6, %v278_v19, 920167782 }
 0x1e2   :  { %v295_v26 = vsel %vm285_vm6, %v281_v20, 1326507024  ;;  %v292_v27 = vsel %vm284_vm7, %v275_v18, %v291_v25  ;;  %v286_v30 = vsel %vm282_vm5, %v266_v24, %v269_v16  ;;  %v288_v31 = vsel %vm284_vm7, %v272_v17, %v287_v21  ;;  %v357_v16 = vpop.permute.xlu0 %356  ;;  %v362_v20 = vld [vmem:[%s1058_s3 + $0x10] sm:$0xff]  ;;  %v494_v21 = vld [vmem:[%s1059_s4] sm:$0xff] }
 0x1e3   :  { %v296_v28 = vsel %vm284_vm7, %v278_v19, %v295_v26  ;;  %v293_v32 = vsel %vm283_vm8, %v290_v22, %v292_v27  ;;  %v289_v38 = vsel %vm283_vm8, %v286_v30, %v288_v31  ;;  %v361_v19 = vld [vmem:[%s1058_s3 + $0x8] sm:$0xff]  ;;  %785 = vmatprep.mubr.msk.f32.mxu1 %vm166_vm2, %v494_v21 }
 0x1e4   :  { %v297_v33 = vsel %vm283_vm8, %v294_v23, %v296_v28  ;;  %v1003_v36 = vmul.u32.u64.low %v298_v29, %v293_v32  ;;  %v1004_v37 = vmul.u32.u64.high %v298_v29, %v293_v32, %v1003_v36  ;;  %v305_v40 = vmul.u32 %v298_v29, %v289_v38  ;;  %v371_v23 = vpop.permute.xlu1 %370 }
 0x1e5   :  { %v1000_v34 = vmul.u32.u64.low %v298_v29, %v297_v33  ;;  %v1001_v35 = vmul.u32.u64.high %v298_v29, %v297_v33, %v1000_v34 }
 0x1e6   :  { %v308_v39 = vadd.s32 1, %v1004_v37  ;;  %v376_v22 = vpop.permute.xlu0 %375 }
 0x1e7   :  { %vm307_vm9 = vc.u32 %v1001_v35, %v1003_v36  ;;  %v306_v53 = vadd.s32 %v1003_v36, %v1001_v35 }
 0x1e8   :  { %v309_v41 = vsel %vm307_vm9, %v308_v39, %v1004_v37  ;;  %v381_v32 = vpop.permute.xlu1 %380 }
 0x1e9   :  { %v310_v42 = vadd.s32 %v309_v41, %v305_v40  ;;  %v495_v40 = vld [vmem:[%s1059_s4 + $0x8] sm:$0xff]  ;;  %v591_v41 = vld [vmem:[%s1060_s5] sm:$0xff] }
 0x1ea   :  { %v386_v29 = vpop.permute.xlu0 %385 }
 0x1eb   :  { %v311_v43 = vadd.s32 536870912, %v310_v42 }
 0x1ed   :  { %v312_v44 = vshrl.u32 %v311_v43, 30 }
 0x1ef   :  { %v313_v45 = vshll.u32 %v312_v44, 30  ;;  %v336_v2 = vsub.s32 4, %v312_v44 }
 0x1f1   :  { %v314_v46 = vsub.s32 %v310_v42, %v313_v45  ;;  %v337_v5 = vsel %vm252_vm11, %v336_v2, %v312_v44  ;;  %v506_v42 = vpop.permute.xlu0 %505  ;;  %v501_v44 = vpop.permute.xlu1 %500 }
 0x1f2   :  { %v339_v7 = vsel %vm251_vm12, 0, %v337_v5 }
 0x1f3   :  { %v316_v47 = vsub.s32 0, %v314_v46  ;;  %v343_v8 = vadd.s32 3, %v339_v7 }
 0x1f5   :  { %v710_v48 = vmin.u32 %v316_v47, %v314_v46  ;;  %v344_v9 = vand.u32 3, %v343_v8 }
 0x1f7   :  { %v318_v49 = vclz %v710_v48  ;;  %vm349_vm13 = vcmp.eq.s32.totalorder %v344_v9, 2  ;;  %vm346_vm14 = vcmp.eq.s32.totalorder %v344_v9, 0  ;;  %vm345_vm15 = vcmp.lt.s32.totalorder %v344_v9, 2 }
 0x1f9   :  { %v711_v50 = vadd.s32 4294967294, %v318_v49 }
 0x1fb   :  { %vm712_vm10 = vcmp.lt.s32.totalorder %v711_v50, 0 }
 0x1fc   :  { %v321_v51 = vsel %vm712_vm10, 0, %v711_v50 }
 0x1fd   :  { %v322_v54 = vsub.s32 32, %v321_v51  ;;  %v326_v55 = vsub.s32 4294967266, %v321_v51  ;;  %v323_v56 = vshll.u32 %v314_v46, %v321_v51  ;;  %v592_v51 = vld [vmem:[%s1060_s5 + $0x8] sm:$0x3] }
 0x1ff   :  { %v324_v58 = vshrl.u32 %v306_v53, %v322_v54  ;;  %v327_v59 = vadd.s32 127, %v326_v55  ;;  %v603_v53 = vpop.permute.xlu0 %602  ;;  %v598_v55 = vpop.permute.xlu1 %597 }
 0x201   :  { %v325_v60 = vor.u32 %v324_v58, %v323_v56  ;;  %v328_v61 = vshll.u32 %v327_v59, 23 }
 0x203   :  { %v329_v62 = vor.u32 4788187, %v328_v61  ;;  %v332_v0 = vcvt.s32.f32 %v325_v60 }
 0x205   :  { %v330_v63 = vand.u32 2147483647, %v329_v62 }
 0x207   :  { %v333_v1 = vmul.f32 %v332_v0, %v330_v63 }
 0x209   :  { %v334_v3 = vxor.u32 2147483648, %v333_v1 }
 0x20b   :  { %v335_v4 = vsel %vm252_vm11, %v334_v3, %v333_v1 }
 0x20c   :  { %v338_v6 = vsel %vm251_vm12, %v994_v52, %v335_v4  ;;  %v363_v52 = vld [vmem:[%s1058_s3 + $0x18] sm:$0xff] }
 0x20d   :  { %838 = vcosq.f32 %v338_v6 }
 0x20e   :  { %840 = vsinq.f32 %v338_v6 }
 0x217   :  { %v839_v10 = vpop.eup %838 }
 0x218   :  { %v841_v11 = vpop.eup %840  ;;  %v350_v12 = vxor.u32 2147483648, %v839_v10 }
 0x219   :  { %v347_v13 = vxor.u32 2147483648, %v841_v11 }
 0x21a   :  { %v351_v14 = vsel %vm349_vm13, %v350_v12, %v841_v11 }
 0x21b   :  { %v348_v15 = vsel %vm346_vm14, %v839_v10, %v347_v13 }
 0x21c   :  { %v352_v57 = vsel %vm345_vm15, %v348_v15, %v351_v14 }
 0x21d   :  { %v353_v17 = vsel %vm342_vm1, nan, %v352_v57 }
 0x21e   :  { %v359_v18 = vmul.f32 %v357_v16, %v353_v17 }
 0x220   :  { %769 = vmatprep.subr.msk.mxu0 %vm401_vm4, %v359_v18 }
 0x221   :  { %770 = vmatpush3.msk.msra.mxu0 %vm401_vm4, %v359_v18 }
 0x222   :  { %772 = vmatmul.mubr.msk.f32.vlgmr.msra.gmra.mrb[4].mxu0 %vm388_vm3, %v361_v19 }
 0x223   :  { %774 = vmatprep.mubr.msk.f32.mxu0 %vm388_vm3, %v362_v20 }
 0x226   :  { %775 = vmatmul.mubr.msk.f32.gmra.mrb[6].mxu0 %vm388_vm3, %v363_v52 }
 0x227   :  { %792 = vmatprep.mubr.msk.f32.mxu0 %vm57_vm0, %v591_v41 }
 0x2f5   :  { %v773_v24 = vpop.f32.mrb[4].mxu0 }
 0x2f6   :  { %v477_v25 = vadd.f32 %v773_v24, %v376_v22  ;;  %v471_v26 = vpop.f32.mrb[5].mxu0 }
 0x2f7   :  { %v472_v27 = vadd.f32 %v471_v26, %v371_v23 }
 0x2f8   :  { %v491_v28 = vmax.f32 %v477_v25, 0.0 }
 0x2f9   :  { %v490_v30 = vmax.f32 %v472_v27, 0.0  ;;  %v776_v31 = vpop.f32.mrb[6].mxu0 }
 0x2fa   :  { %v487_v33 = vadd.f32 %v776_v31, %v386_v29  ;;  %v481_v34 = vpop.f32.mrb[7].mxu0 }
 0x2fb   :  { %v805_v35 = vpack.c.bf16 %v491_v28, %v490_v30  ;;  %v482_v36 = vadd.f32 %v481_v34, %v381_v32 }
 0x2fc   :  { %v493_v37 = vmax.f32 %v487_v33, 0.0 }
 0x2fd   :  { %v492_v38 = vmax.f32 %v482_v36, 0.0  ;;  %806 = vmatprep.subr.bf16.mxu1 %v805_v35 }
 0x2fe   :  { %808 = vmatpush3.bf16.msra.mxu1 %v805_v35 }
 0x2ff   :  { %v809_v39 = vpack.c.bf16 %v493_v37, %v492_v38 }
 0x301   :  { %810 = vmatprep.subr.bf16.mxu1 %v809_v39 }
 0x302   :  { %812 = vmatpush3.bf16.msra.mxu1 %v809_v39 }
 0x305   :  { %786 = vmatmul.mubr.msk.f32.vlgmr.msra.gmra.mrb[2].mxu1 %vm166_vm2, %v495_v40 }
 0x3d8   :  { %v787_v43 = vpop.f32.mrb[2].mxu1 }
 0x3d9   :  { %v586_v45 = vadd.f32 %v787_v43, %v506_v42  ;;  %v580_v46 = vpop.f32.mrb[3].mxu1 }
 0x3da   :  { %v581_v47 = vadd.f32 %v580_v46, %v501_v44 }
 0x3db   :  { %v590_v48 = vmax.f32 %v586_v45, 0.0 }
 0x3dc   :  { %v589_v49 = vmax.f32 %v581_v47, 0.0 }
 0x3de   :  { %v813_v50 = vpack.c.bf16 %v590_v48, %v589_v49 }
 0x3e0   :  { %814 = vmatprep.subr.bf16.mxu0 %v813_v50 }
 0x3e1   :  { %816 = vmatpush3.bf16.msra.mxu0 %v813_v50 }
 0x3e4   :  { %793 = vmatmul.mubr.msk.f32.vlgmr.msra.gmra.mrb[8].mxu0 %vm57_vm0, %v592_v51 }
 0x4b7   :  { %v794_v54 = vpop.f32.mrb[8].mxu0 }
 0x4b8   :  { %v683_v56 = vadd.f32 %v794_v54, %v603_v53  ;;  %v677_v58 = vpop.f32.mrb[9].mxu0 }
 0x4b9   :  { %v678_v59 = vadd.f32 %v677_v58, %v598_v55 }
 0x4ba   :  { %687 = vst [vmem:[#allocation2 + $0x8] sm:$0x3] %v683_v56 }
 0x4bb   :  { %686 = vst [vmem:[#allocation2] sm:$0xff] %v678_v59 }
 0x4bc   :  { %853 = shalt.err (!%p850_p4)
}
 0x4bd   :  { %s854_s0 = scalar_lea.hbm %s1062_s7, 256 }
 0x4be   :  { %p855_p5 = scmp.ne.s32.totalorder %s1062_s7, %s854_s0  ;;  %p858_p6 = scmp.lt.u32.totalorder %s854_s0, %s1062_s7 }
 0x4c0   :  { %p860_p7 = pnand %p858_p6, %p855_p5 }
 0x4c2   :  { %863 = shalt.err (!%p860_p7)
}
 0x4c3   :  { %s877_s15 = smov 128   ;;  %s878_s16 = smov 8  }
 0x4c4   :  { %699 = dma.vmem_to_hbm [thread:$0]  %s694_s8, 256, %s1062_s7, [#allocation3], %s877_s15, %s877_s15, %s878_s16  }
 0x4c5   :  { %864 = dma.done.wait [#allocation3], 256  }
 0x4c6   :  { %865 = vsyncadd [#allocation3], 4294967040 }
 0x4c7   :  { %703 = vsyncpa [#allocation3], 1 }

</bundles_post_ra>
